<compile_context>
chip_gen: v7x
topology: tpu7x:2x2x1
jax: 0.10.0
libtpu: 0.0.40
codegen_flags: <defaults>
</compile_context>

<pallas_src>
import functools

import jax
import jax.numpy as jnp
from jax import lax
from jax.experimental import pallas as pl
from jax.experimental.pallas import tpu as pltpu


def _coral_kernel(src_ref, tgt_ref, out_ref, *, bs, b_blk, is_sqrt, row_gram,
                  mm_dtype, inv_ns1, inv_nt1, inv_4d2):
    """One grid step == up to b_blk batch elements (fully batched, no unroll).

    src_ref: VMEM (b_blk, ns, d)
    tgt_ref: VMEM (b_blk, nt, d)
    out_ref: VMEM (1, 8, 128) lane-dense tile broadcast-filled with this
             block's (already /(4 d^2)) partial loss sum; wrapper reads [:,0,0].
    """
    s = src_ref[...].astype(jnp.float32)              # (b_blk, ns, d)
    t = tgt_ref[...].astype(jnp.float32)              # (b_blk, nt, d)

    # Center. (PyTorch uses mean - x; the sign cancels in the Gram products.)
    xm = jnp.mean(s, axis=1, keepdims=True) - s       # (b_blk, ns, d)
    xmt = jnp.mean(t, axis=1, keepdims=True) - t      # (b_blk, nt, d)

    # Matmul operands (bf16 halves vreg/VMEM footprint when inputs are bf16;
    # accumulation stays f32 via preferred_element_type).
    a = xm.astype(mm_dtype)
    b = xmt.astype(mm_dtype)

    if row_gram:
        # Instance-space Grams: contraction over d == last (lane) dim of both
        # operands -> no transposed feed, no (d, d) temporary, no concatenates.
        g_ss = jnp.einsum("bnd,bmd->bnm", a, a,
                          preferred_element_type=jnp.float32)
        g_tt = jnp.einsum("bnd,bmd->bnm", b, b,
                          preferred_element_type=jnp.float32)
        g_st = jnp.einsum("bnd,bmd->bnm", a, b,
                          preferred_element_type=jnp.float32)
        ssq = (inv_ns1 * inv_ns1
               * jnp.sum(g_ss * g_ss, axis=(1, 2), keepdims=True)
               + inv_nt1 * inv_nt1
               * jnp.sum(g_tt * g_tt, axis=(1, 2), keepdims=True)
               - 2.0 * inv_ns1 * inv_nt1
               * jnp.sum(g_st * g_st, axis=(1, 2), keepdims=True))
    else:
        # Feature-space (d, d) form — only used when ns+nt > d (fewer MACs).
        xc = jnp.einsum("bnd,bne->bde", a, a,
                        preferred_element_type=jnp.float32)
        xct = jnp.einsum("bnd,bne->bde", b, b,
                         preferred_element_type=jnp.float32)
        diff = xc * inv_ns1 - xct * inv_nt1
        ssq = jnp.sum(diff * diff, axis=(1, 2), keepdims=True)

    per_val = jnp.sqrt(ssq) if is_sqrt else ssq        # (b_blk, 1, 1)

    if bs % b_blk != 0:
        # Ragged batch tail handled in-kernel (no wrapper-side jnp.pad / HBM
        # copy): the out-of-range rows of the last block hold garbage; mask
        # their (possibly NaN) contribution with a select.
        i = pl.program_id(0)
        bidx = lax.broadcasted_iota(jnp.int32, per_val.shape, 0)
        per_val = jnp.where(bidx < bs - i * b_blk, per_val, 0.0)

    block_sum = jnp.sum(per_val) * inv_4d2
    out_ref[...] = jnp.full(out_ref.shape, block_sum, dtype=jnp.float32)


def _tpu_vmem_budget():
    """Return (vmem_limit_cap, working_set_budget) in bytes, per generation."""
    try:
        cap = int(pltpu.get_tpu_info().vmem_capacity_bytes)
    except Exception:
        cap = 64 << 20                      # v7x worst case (per TensorCore)
    # ~56 MiB on v7x (64 MiB physical), ~100 MiB on v5e/v6e (128 MiB physical).
    limit_cap = min(cap - (8 << 20), 100 << 20)
    return limit_cap, limit_cap // 2


def _pick_batch_block(bs, ns, nt, d, itemsize, row_gram, budget):
    """Largest per-step batch block fitting the VMEM budget, with perf caps."""
    n = ns + nt
    gram_elems = (ns * ns + nt * nt + ns * nt) if row_gram else 2 * d * d
    per_batch = (2 * itemsize * n * d       # double-buffered input tiles
                 + 3 * 4 * n * d            # ~3 live f32 copies of centered ops
                 + 4 * gram_elems)          # f32 Gram / diff blocks
    b_blk = max(1, budget // max(per_batch, 1))
    # Keep per-step input DMAs at a few MiB so the grid retains enough steps
    # for pipelining while still amortizing the ~0.35us per-step overhead.
    b_blk = min(b_blk, max(1, (4 << 20) // max(itemsize * n * d, 1)))
    if bs >= 2:
        # >= 2 grid steps so the "parallel" batch axis can shard across the
        # two TensorCores of a v7x chip (no effect on single-TC v5e/v6e).
        b_blk = min(b_blk, pl.cdiv(bs, 2))
    return int(max(1, min(b_blk, bs))), per_batch


def image_level_coral_loss(source: jax.Array, target: jax.Array,
                           is_sqrt: bool = False) -> jax.Array:
    """Pallas TPU equivalent of ImageLevelCoralLoss.forward. Returns scalar."""
    assert source.ndim == 3 and target.ndim == 3
    bs, ns, d = source.shape
    bs_t, nt, d_t = target.shape
    assert bs == bs_t and d == d_t
    assert ns > 1 and nt > 1, "covariance normalizers require >= 2 instances"

    row_gram = (ns + nt) <= d
    limit_cap, budget = _tpu_vmem_budget()
    b_blk, per_batch_bytes = _pick_batch_block(
        bs, ns, nt, d, source.dtype.itemsize, row_gram, budget)
    num_blocks = pl.cdiv(bs, b_blk)

    mm_dtype = jnp.bfloat16 if source.dtype == jnp.bfloat16 else jnp.float32

    kernel = functools.partial(
        _coral_kernel, bs=bs, b_blk=b_blk, is_sqrt=is_sqrt, row_gram=row_gram,
        mm_dtype=mm_dtype,
        inv_ns1=1.0 / float(ns - 1), inv_nt1=1.0 / float(nt - 1),
        inv_4d2=1.0 / (4.0 * float(d) * float(d)))

    if row_gram:
        pair_terms = ns * ns + nt * nt + ns * nt
        flops_per_batch = 2 * pair_terms * d + 3 * pair_terms + 4 * (ns + nt) * d
    else:
        flops_per_batch = 2 * (ns + nt) * d * d + 4 * d * d + 4 * (ns + nt) * d
    cost = pl.CostEstimate(
        flops=int(bs * flops_per_batch),
        transcendentals=int(bs if is_sqrt else 0),
        bytes_accessed=int(source.dtype.itemsize * bs * (ns + nt) * d
                           + 4 * num_blocks * 8 * 128))

    vmem_need = b_blk * per_batch_bytes + 2 * 8 * 128 * 4
    # TODO(synk): if a *single* batch element's working set ever exceeds the
    # physical-VMEM cap (huge ns/nt and huge d), tile the Gram over instance /
    # feature blocks instead of relying on the limit below.
    vmem_limit = int(max(16 << 20, min(vmem_need + (8 << 20), limit_cap)))

    partial_tiles = pl.pallas_call(
        kernel,
        out_shape=jax.ShapeDtypeStruct((num_blocks, 8, 128), jnp.float32),
        grid_spec=pltpu.PrefetchScalarGridSpec(
            num_scalar_prefetch=0,
            grid=(num_blocks,),
            in_specs=[
                pl.BlockSpec((b_blk, ns, d), lambda i: (i, 0, 0)),
                pl.BlockSpec((b_blk, nt, d), lambda i: (i, 0, 0)),
            ],
            out_specs=pl.BlockSpec((1, 8, 128), lambda i: (i, 0, 0)),
        ),
        compiler_params=pltpu.CompilerParams(
            dimension_semantics=("parallel",),
            vmem_limit_bytes=vmem_limit),
        cost_estimate=cost,
    )(source, target)

    # Independent per-block partial sums (already /(4 d^2)) -> mean over the
    # *true* batch size (masked tail elements contribute exactly 0).
    return jnp.sum(partial_tiles[:, 0, 0]) * (1.0 / float(bs))


def _reference(source, target, is_sqrt=False):
    """Pure-JAX reference mirroring the PyTorch module (for sanity check)."""
    bs, ns, d = source.shape
    nt = target.shape[1]
    xm = jnp.mean(source, axis=1, keepdims=True) - source
    xc = jnp.einsum("bnd,bne->bde", xm, xm) / (ns - 1)
    xmt = jnp.mean(target, axis=1, keepdims=True) - target
    xct = jnp.einsum("bnd,bne->bde", xmt, xmt) / (nt - 1)
    loss = jnp.sum((xc - xct) ** 2, axis=(1, 2))
    loss = (jnp.sqrt(loss) if is_sqrt else loss) / (4 * d * d)
    return jnp.mean(loss)


if __name__ == "__main__":
    key = jax.random.PRNGKey(0)
    k1, k2 = jax.random.split(key)

    bs, ns, nt, d = 2, 8, 8, 32
    source = jax.random.normal(k1, (bs, ns, d), dtype=jnp.float32)
    target = jax.random.normal(k2, (bs, nt, d), dtype=jnp.float32)

    for is_sqrt in (False, True):
        loss = jax.block_until_ready(
            image_level_coral_loss(source, target, is_sqrt=is_sqrt))
        ref = jax.block_until_ready(_reference(source, target, is_sqrt=is_sqrt))
        assert jnp.allclose(loss, ref, rtol=1e-4, atol=1e-6), (is_sqrt, loss, ref)

    print("KERNEL_OK")
</pallas_src>

<mosaic_0001>
module attributes {stable_mosaic.version = 11 : i64} {
  func.func @_coral_kernel(%arg0: i32, %arg1: memref<1x8x32xf32, #tpu.memory_space<vmem>>, %arg2: memref<1x8x32xf32, #tpu.memory_space<vmem>>, %arg3: memref<1x8x128xf32, #tpu.memory_space<vmem>>) attributes {dimension_semantics = [#tpu.dimension_semantics<parallel>], iteration_bounds = array<i64: 2>, scalar_prefetch = 0 : i64, scratch_operands = 0 : i64, tpu.core_type = #tpu.core_type<tc>, window_params = [{transform_indices = @transform_0, window_bounds = array<i64: 1, 8, 32>}, {transform_indices = @transform_1, window_bounds = array<i64: 1, 8, 32>}, {transform_indices = @transform_2, window_bounds = array<i64: 1, 8, 128>}]} {
    %c0 = arith.constant 0 : index
    %c0_0 = arith.constant 0 : index
    %c0_1 = arith.constant 0 : index
    %0 = vector.load %arg1[%c0, %c0_0, %c0_1] : memref<1x8x32xf32, #tpu.memory_space<vmem>>, vector<1x8x32xf32>
    %c0_2 = arith.constant 0 : index
    %c0_3 = arith.constant 0 : index
    %c0_4 = arith.constant 0 : index
    %1 = vector.load %arg2[%c0_2, %c0_3, %c0_4] : memref<1x8x32xf32, #tpu.memory_space<vmem>>, vector<1x8x32xf32>
    %cst = arith.constant dense<0.000000e+00> : vector<1x32xf32>
    %2 = vector.multi_reduction <add>, %0, %cst [1] : vector<1x8x32xf32> to vector<1x32xf32>
    %3 = vector.shape_cast %2 : vector<1x32xf32> to vector<1x1x32xf32>
    %cst_5 = arith.constant 8.000000e+00 : f32
    %4 = vector.broadcast %cst_5 : f32 to vector<1x1x32xf32>
    %5 = arith.divf %3, %4 : vector<1x1x32xf32>
    %6 = vector.broadcast %5 : vector<1x1x32xf32> to vector<1x8x32xf32>
    %7 = arith.subf %6, %0 : vector<1x8x32xf32>
    %cst_6 = arith.constant dense<0.000000e+00> : vector<1x32xf32>
    %8 = vector.multi_reduction <add>, %1, %cst_6 [1] : vector<1x8x32xf32> to vector<1x32xf32>
    %9 = vector.shape_cast %8 : vector<1x32xf32> to vector<1x1x32xf32>
    %cst_7 = arith.constant 8.000000e+00 : f32
    %10 = vector.broadcast %cst_7 : f32 to vector<1x1x32xf32>
    %11 = arith.divf %9, %10 : vector<1x1x32xf32>
    %12 = vector.broadcast %11 : vector<1x1x32xf32> to vector<1x8x32xf32>
    %13 = arith.subf %12, %1 : vector<1x8x32xf32>
    "tpu.trace_start"() <{level = 10 : i32, message = "bnd,bmd->bnm"}> : () -> ()
    %cst_8 = arith.constant dense<0.000000e+00> : vector<1x8x8xf32>
    %14 = tpu.matmul %7, %7, %cst_8 {dimension_numbers = #tpu.dot_dimension_numbers<[2], [2], [1], [1], [0, 0, 0, 1, 1, 1], [0], [0]>} : vector<1x8x32xf32>, vector<1x8x32xf32>, vector<1x8x8xf32> -> vector<1x8x8xf32>
    %cst_9 = arith.constant dense<0.000000e+00> : vector<1x8x8xf32>
    %15 = tpu.matmul %13, %13, %cst_9 {dimension_numbers = #tpu.dot_dimension_numbers<[2], [2], [1], [1], [0, 0, 0, 1, 1, 1], [0], [0]>} : vector<1x8x32xf32>, vector<1x8x32xf32>, vector<1x8x8xf32> -> vector<1x8x8xf32>
    %cst_10 = arith.constant dense<0.000000e+00> : vector<1x8x8xf32>
    %16 = tpu.matmul %7, %13, %cst_10 {dimension_numbers = #tpu.dot_dimension_numbers<[2], [2], [1], [1], [0, 0, 0, 1, 1, 1], [0], [0]>} : vector<1x8x32xf32>, vector<1x8x32xf32>, vector<1x8x8xf32> -> vector<1x8x8xf32>
    "tpu.trace_stop"() : () -> ()
    %17 = arith.mulf %14, %14 : vector<1x8x8xf32>
    %cst_11 = arith.constant dense<0.000000e+00> : vector<1xf32>
    %18 = vector.multi_reduction <add>, %17, %cst_11 [1, 2] : vector<1x8x8xf32> to vector<1xf32>
    %19 = vector.shape_cast %18 : vector<1xf32> to vector<1x1x1xf32>
    %cst_12 = arith.constant 0.0204081628 : f32
    %20 = vector.broadcast %cst_12 : f32 to vector<1x1x1xf32>
    %21 = arith.mulf %20, %19 : vector<1x1x1xf32>
    %22 = arith.mulf %15, %15 : vector<1x8x8xf32>
    %cst_13 = arith.constant dense<0.000000e+00> : vector<1xf32>
    %23 = vector.multi_reduction <add>, %22, %cst_13 [1, 2] : vector<1x8x8xf32> to vector<1xf32>
    %24 = vector.shape_cast %23 : vector<1xf32> to vector<1x1x1xf32>
    %cst_14 = arith.constant 0.0204081628 : f32
    %25 = vector.broadcast %cst_14 : f32 to vector<1x1x1xf32>
    %26 = arith.mulf %25, %24 : vector<1x1x1xf32>
    %27 = arith.addf %21, %26 : vector<1x1x1xf32>
    %28 = arith.mulf %16, %16 : vector<1x8x8xf32>
    %cst_15 = arith.constant dense<0.000000e+00> : vector<1xf32>
    %29 = vector.multi_reduction <add>, %28, %cst_15 [1, 2] : vector<1x8x8xf32> to vector<1xf32>
    %30 = vector.shape_cast %29 : vector<1xf32> to vector<1x1x1xf32>
    %cst_16 = arith.constant 0.0408163257 : f32
    %31 = vector.broadcast %cst_16 : f32 to vector<1x1x1xf32>
    %32 = arith.mulf %31, %30 : vector<1x1x1xf32>
    %33 = arith.subf %27, %32 : vector<1x1x1xf32>
    %34 = vector.shape_cast %33 : vector<1x1x1xf32> to vector<1x1x1x1xf32>
    %cst_17 = arith.constant dense<0.000000e+00> : vector<1xf32>
    %35 = vector.multi_reduction <add>, %34, %cst_17 [1, 2, 3] : vector<1x1x1x1xf32> to vector<1xf32>
    %36 = vector.shape_cast %35 : vector<1xf32> to vector<1x1x1x1xf32>
    %37 = vector.extract %36[0, 0, 0, 0] : f32 from vector<1x1x1x1xf32>
    %cst_18 = arith.constant 2.44140625E-4 : f32
    %38 = arith.mulf %37, %cst_18 : f32
    %39 = vector.broadcast %38 : f32 to vector<1x8x128xf32>
    %c0_19 = arith.constant 0 : index
    %c0_20 = arith.constant 0 : index
    %c0_21 = arith.constant 0 : index
    %40 = vector.load %arg3[%c0_19, %c0_20, %c0_21] : memref<1x8x128xf32, #tpu.memory_space<vmem>>, vector<1x8x128xf32>
    tpu.vector_store %arg3[%c0_19, %c0_20, %c0_21], %39 {strides = array<i32>} : memref<1x8x128xf32, #tpu.memory_space<vmem>>, vector<1x8x128xf32>,
    return
  }
  func.func @transform_0(%arg0: i32) -> (i32, i32, i32) {
    %c0_i32 = arith.constant 0 : i32
    %c0_i32_0 = arith.constant 0 : i32
    %c0_i32_1 = arith.constant 0 : i32
    return %arg0, %c0_i32, %c0_i32_0 : i32, i32, i32
  }
  func.func @transform_1(%arg0: i32) -> (i32, i32, i32) {
    %c0_i32 = arith.constant 0 : i32
    %c0_i32_0 = arith.constant 0 : i32
    %c0_i32_1 = arith.constant 0 : i32
    return %arg0, %c0_i32, %c0_i32_0 : i32, i32, i32
  }
  func.func @transform_2(%arg0: i32) -> (i32, i32, i32) {
    %c0_i32 = arith.constant 0 : i32
    %c0_i32_0 = arith.constant 0 : i32
    %c0_i32_1 = arith.constant 0 : i32
    return %arg0, %c0_i32, %c0_i32_0 : i32, i32, i32
  }
}

</mosaic_0001>

<bundles_post_ra>
// kernel: tpu_custom_call.1
= control target key start
LH: loop header
LB: loop body
LE: loop exit
PB: predicated region body
PF: predicated region fallthrough
CT: control target
= control target key end

     0   :  { %7 = vsyncpa [#allocation3], 0  ;;  %s1056_s0 = inlined_call_operand.hbm [shape: f32[2,8,32], index: 0, kind: input, shape index: {}]   ;;  %s1057_s1 = inlined_call_operand.hbm [shape: f32[2,8,32], index: 1, kind: input, shape index: {}]   ;;  %s1058_s2 = inlined_call_operand.hbm [shape: f32[2,8,128], index: 2, kind: output, shape index: {}]  }
   0x1   :  { %9 = vsyncpa [#allocation3 + $0x1], 0 }
   0x2   :  { %10 = vsyncpa [#allocation6], 0 }
   0x3   :  { %12 = vsyncpa [#allocation6 + $0x1], 0 }
   0x4   :  { %13 = vsyncpa [#allocation4], 0 }
   0x5   :  { %15 = vsyncpa [#allocation4 + $0x1], 0  ;;  %s831_s9 = smov 0   ;;  %s833_s10 = smov 0  }
   0x6   :  { %s835_s11 = smov 0   ;;  %s837_s12 = smov 0  }
   0x7 LB: > { %s852_s13 = sadd.s32 4294967295, %s809_s12   ;;  %s582_s14 = sadd.s32 4294967294, %s809_s12   ;;  %s809_s12 = sphi %s837_s12, %s1077_s12   ;;  %s805_s11 = sphi %s835_s11, %s1076_s11   ;;  %s801_s10 = sphi %s833_s10, %s1075_s10   ;;  %s797_s9 = sphi %s831_s9, %s1074_s9  }
   0x8   : > { %s856_s15 = sadd.s32 1, %s809_s12   ;;  %s28_s16 = sadd.s32 1, %s805_s11 }
   0x9   : > { %s25_s17 = ssub.s32 %s809_s12, %s856_s15  ;;  %p35_p0 = scmp.ne.s32.totalorder %s805_s11, %s801_s10 }
   0xa   : > { %p26_p1 = scmp.eq.s32.totalorder %s25_s17, 0  ;;  %p36_p2 = scmp.eq.s32.totalorder %s809_s12, 0 }
   0xb   : > { %p41_p3 = scmp.ne.s32.totalorder %s801_s10, %s797_s9  ;;  %p42_p4 = scmp.eq.s32.totalorder %s852_s13, 0 }
   0xc   : > { %s868_s18 = scalar_select %p26_p1, %s805_s11, %s28_s16  }
   0xd   : > { %p870_p5 = por %p36_p2, %p35_p0  ;;  %p874_p6 = por %p42_p4, %p41_p3 }
   0xe   : > { %p91_p7 = scmp.eq.s32.totalorder %s852_s13, 1  ;;  %p97_p8 = scmp.eq.s32.totalorder %s582_s14, 1 }
   0xf   : > { %s1062_s20 = scalar_select %p874_p6, 1, 0 }
  0x10   : > { %p643_p10 = scmp.lt.s32.totalorder %s809_s12, 2  ;;  %p881_p11 = por %p91_p7, %p35_p0 }
  0x11   : > { %p885_p12 = por %p97_p8, %p41_p3  ;;  %s890_s23 = sand.u32 1, %s805_s11  }
  0x12   : > { %s1063_s21 = scalar_select %p881_p11, 1, 0 }
  0x13   : > { %s1064_s22 = scalar_select %p885_p12, 1, 0 }
  0x14   : > { %s586_s24 = sshll.u32 %s809_s12, 7  ;;  %s585_s25 = sshll.u32 %s890_s23, 3 }
  0x15   : > { %s899_s28 = scalar_lea.hbm %s1056_s0, %s586_s24  ;;  %s121_s29 = scalar_lea.vmem [#allocation2], %s585_s25 }
  0x16   : > { %s128_s30 = sshll.u32 %s121_s29, 4  ;;  %p905_p13 = pnand %p643_p10, %p870_p5  ;;  %s909_s30 = int_to_ptr.vmem [resolvable:$true] %s128_s30 }
  0x17   : > { %s118_s4 = scalar_lea.sflag [#allocation3], %s890_s23  ;;  %s679_s5 = scalar_lea.hbm %s899_s28, 128 }
  0x18   : > { %p680_p2 = scmp.ne.s32.totalorder %s899_s28, %s679_s5  ;;  %p681_p3 = pneg %p905_p13 }
  0x19   : > { %s684_s8 = scalar_lea.hbm %s1056_s0, 256  ;;  %p685_p5 = scmp.lt.u32.totalorder %s899_s28, %s1056_s0 }
  0x1a   : > { %p682_p4 = pnand %p681_p3, %p680_p2  ;;  %p686_p8 = scmp.lt.u32.totalorder %s684_s8, %s679_s5 }
  0x1b   : > { %p688_p9 = scmp.lt.u32.totalorder %s679_s5, %s899_s28 }
  0x1c   : > { %p683_p7 = pneg %p682_p4  ;;  %p687_p10 = por %p686_p8, %p685_p5 }
  0x1e   : > { %p689_p0 = por %p688_p9, %p687_p10 }
  0x20   : > { %p690_p1 = pnand %p689_p0, %p683_p7 }
  0x22   : > { %693 = shalt.err (!%p690_p1)
}
  0x23   : > { %s694_s17 = scalar_lea.vmem %s909_s30, 128  ;;  %s811_s19 = smov [#allocation2]  }
  0x24   : > { %p695_p2 = scmp.ne.s32.totalorder %s909_s30, %s694_s17  ;;  %s699_s26 = sshll.u32 %s811_s19, 4  ;;  %s700_s26 = int_to_ptr.vmem [resolvable:$false] %s699_s26 }
  0x25   : > { %s701_s27 = scalar_lea.vmem %s700_s26, 256  ;;  %p702_p11 = scmp.lt.s32.totalorder %s909_s30, %s700_s26 }
  0x26   : > { %p697_p4 = pnand %p695_p2, %p681_p3  ;;  %p703_p5 = scmp.lt.s32.totalorder %s701_s27, %s694_s17 }
  0x28   : > { %p698_p12 = pneg %p697_p4  ;;  %p704_p8 = por %p703_p5, %p702_p11 }
  0x2a   : > { %p705_p9 = pnand %p704_p8, %p698_p12 }
  0x2c   : > { %708 = shalt.err (!%p705_p9)
}
  0x2d   : > { %635 = dma.hbm_to_vmem [thread:$0]  (!%p905_p13), %s899_s28, 128, %s909_s30, %s118_s4  }
  0x2e   : > { %p1066_p0 = scmp.lt.s32.totalorder %s809_s12, 3  ;;  %p1067_p1 = scmp.ge.s32.totalorder %s809_s12, 1 }
  0x2f   : > { %s952_s7 = scalar_lea.hbm %s1057_s1, %s586_s24  ;;  %s139_s8 = scalar_lea.vmem [#allocation5], %s585_s25 }
  0x30   : > { %p943_p7 = pnand %p1067_p1, %p1066_p0  ;;  %s146_s14 = sshll.u32 %s139_s8, 4  ;;  %s147_s14 = int_to_ptr.vmem [resolvable:$true] %s146_s14 }
  0x31   : > { %s136_s28 = scalar_lea.sflag [#allocation6], %s890_s23  ;;  %s709_s30 = scalar_lea.hbm %s952_s7, 128 }
  0x32   : > { %s1068_s29 = scalar_select %p943_p7, 1, 0 }
  0x33   : > { %p710_p11 = scmp.ne.s32.totalorder %s952_s7, %s709_s30  ;;  %s714_s24 = scalar_lea.hbm %s1057_s1, 256 }
  0x34   : > { %p715_p2 = scmp.lt.u32.totalorder %s952_s7, %s1057_s1  ;;  %p716_p4 = scmp.lt.u32.totalorder %s714_s24, %s709_s30 }
  0x35   : > { %p712_p12 = pnand %p710_p11, %p681_p3  ;;  %p718_p8 = scmp.lt.u32.totalorder %s709_s30, %s952_s7 }
  0x36   : > { %p717_p5 = por %p716_p4, %p715_p2 }
  0x37   : > { %p713_p10 = pneg %p712_p12 }
  0x38   : > { %p719_p9 = por %p718_p8, %p717_p5 }
  0x3a   : > { %p720_p0 = pnand %p719_p9, %p713_p10 }
  0x3c   : > { %723 = shalt.err (!%p720_p0)
}
  0x3d   : > { %s724_s23 = scalar_lea.vmem %s147_s14, 128  ;;  %s812_s25 = smov [#allocation5]  }
  0x3e   : > { %p725_p1 = scmp.ne.s32.totalorder %s147_s14, %s724_s23  ;;  %s729_s26 = sshll.u32 %s812_s25, 4  ;;  %s730_s26 = int_to_ptr.vmem [resolvable:$false] %s729_s26 }
  0x3f   : > { %s731_s27 = scalar_lea.vmem %s730_s26, 256  ;;  %p732_p6 = scmp.lt.s32.totalorder %s147_s14, %s730_s26 }
  0x40   : > { %p727_p11 = pnand %p725_p1, %p681_p3  ;;  %p733_p7 = scmp.lt.s32.totalorder %s731_s27, %s724_s23 }
  0x42   : > { %p728_p12 = pneg %p727_p11  ;;  %p734_p2 = por %p733_p7, %p732_p6 }
  0x44   : > { %p735_p4 = pnand %p734_p2, %p728_p12 }
  0x46   : > { %738 = shalt.err (!%p735_p4)
}
  0x47   : > { %638 = dma.hbm_to_vmem [thread:$0]  (!%p905_p13), %s952_s7, 128, %s147_s14, %s136_s28  }
  0x48   : > { %p1069_p10 = scmp.ne.s32.totalorder %s1068_s29, 0 }
  0x49   : > { %s979_s5 = sand.u32 (!%p1069_p10), 1, %s801_s10   ;;  %p1070_p6 = scmp.ne.s32.totalorder (!%p1069_p10), %s1062_s20, 0 }
  0x4a   : > { %155 = sbr.rel (%p1069_p10) target bundleno = 551 (0x227), region = 28  ;;  %s982_s6 = sshll.u32 (!%p1069_p10), %s979_s5, 3 }
  0x4b   : > { %s158_s8 = scalar_lea.sflag (!%p1069_p10), [#allocation3], %s979_s5  ;;  %s161_s30 = scalar_lea.vmem (!%p1069_p10), [#allocation2], %s982_s6 }
  0x51   : > { %784 = dma.done.wait (%p1070_p6), %s158_s8, 128  }
  0x52   : > { %786 = vsyncadd (%p1070_p6), %s158_s8, 4294967168  ;;  %s167_s3 = scalar_lea.sflag [#allocation6], %s979_s5  ;;  %s170_s29 = scalar_lea.vmem [#allocation5], %s982_s6 }
  0x53   : > { %788 = dma.done.wait (%p1070_p6), %s167_s3, 128  }
  0x54   : > { %790 = vsyncadd (%p1070_p6), %s167_s3, 4294967168  ;;  %v813_v0 = vmov 0.0   ;;  %vm814_vm0 = vmmov 0   ;;  %vm198_vm1 = vcmask 261120   ;;  %v196_v1 = vld [vmem:[%s161_s30] sm:$0xff]  ;;  %v197_v2 = vld [vmem:[%s170_s29] sm:$0xff] }
  0x55   : > { %609 = vmatprep.subr.mxu0 %v813_v0  ;;  %611 = vmatprep.mubr.msk.f32.mxu0 %vm814_vm0, %v813_v0  ;;  %v199_v3 = vsel %vm198_vm1, %v196_v1, 0.0  ;;  %v209_v4 = vsel %vm198_vm1, %v197_v2, 0.0  ;;  %vm435_vm2 = vcmask 64512   ;;  %s195_s20 = scalar_lea.vmem [#allocation7], %s982_s6  ;;  %s600_s14 = sshll.u32 %s852_s13, 7 }
  0x56   : > { %614 = vmatprep.subr.mxu1 %v813_v0  ;;  %616 = vmatprep.mubr.msk.f32.mxu1 %vm814_vm0, %v813_v0  ;;  %v200_v5 = vrot.slane %v199_v3, 4  ;;  %v210_v6 = vrot.slane %v209_v4, 4  ;;  %s489_s7 = sshll.u32 %s195_s20, 4  ;;  %s1012_s17 = scalar_lea.hbm %s1058_s2, %s600_s14  ;;  %s1014_s7 = int_to_ptr.vmem [resolvable:$true] %s489_s7 }
  0x57   : > { %s476_s19 = scalar_lea.sflag [#allocation4], %s979_s5  ;;  %s739_s23 = scalar_lea.vmem %s1014_s7, 128 }
  0x58   : > { %v201_v7 = vadd.f32 %v200_v5, %v199_v3  ;;  %v211_v8 = vadd.f32 %v210_v6, %v209_v4  ;;  %p740_p13 = scmp.ne.s32.totalorder %s1014_s7, %s739_s23  ;;  %p1071_p3 = scmp.ne.s32.totalorder %s1063_s21, 0 }
  0x59   : > { %s815_s13 = smov [#allocation7]  }
  0x5a   : > { %v202_v9 = vrot.slane %v201_v7, 2  ;;  %v212_v10 = vrot.slane %v211_v8, 2  ;;  %p741_p7 = pnand %p740_p13, %p1071_p3  ;;  %s743_s25 = sshll.u32 %s815_s13, 4  ;;  %s744_s25 = int_to_ptr.vmem [resolvable:$false] %s743_s25 }
  0x5b   : > { %s745_s26 = scalar_lea.vmem %s744_s25, 256  ;;  %p746_p8 = scmp.lt.s32.totalorder %s1014_s7, %s744_s25 }
  0x5c   : > { %v203_v11 = vadd.f32 %v202_v9, %v201_v7  ;;  %v213_v12 = vadd.f32 %v212_v10, %v211_v8  ;;  %p742_p5 = pneg %p741_p7  ;;  %p747_p9 = scmp.lt.s32.totalorder %s745_s26, %s739_s23 }
  0x5e   : > { %v204_v13 = vrot.slane %v203_v11, 1  ;;  %v214_v14 = vrot.slane %v213_v12, 1  ;;  %p748_p0 = por %p747_p9, %p746_p8 }
  0x60   : > { %v205_v15 = vadd.f32 %v204_v13, %v203_v11  ;;  %v215_v16 = vadd.f32 %v214_v14, %v213_v12  ;;  %p749_p1 = pnand %p748_p0, %p742_p5 }
  0x62   : > { %v207_v17 = vmul.f32 0.125, %v205_v15  ;;  %v216_v18 = vmul.f32 0.125, %v215_v16 }
  0x64   : > { %v208_v19 = vsub.f32 %v207_v17, %v196_v1  ;;  %v217_v20 = vsub.f32 %v216_v18, %v197_v2 }
  0x66   : > { %610 = vmatpush3.xpose.msk.msra.mxu0 %vm198_vm1, %v208_v19  ;;  %615 = vmatpush3.xpose.msk.msra.mxu1 %vm198_vm1, %v217_v20 }
  0x67   : > { %619 = vmatprep.subr.mxu0 %v813_v0 }
  0x69   : > { %612 = vmatmul.mubr.msk.f32.vlgmr.msra.gmra.mrb[0].mxu0 %vm198_vm1, %v208_v19  ;;  %617 = vmatmul.mubr.msk.f32.vlgmr.msra.gmra.mrb[0].mxu1 %vm198_vm1, %v217_v20 }
  0x6a   : > { %620 = vmatpush3.xpose.msk.msra.mxu0 %vm198_vm1, %v217_v20  ;;  %621 = vmatprep.mubr.msk.f32.mxu0 %vm814_vm0, %v813_v0 }
  0x6d   : > { %622 = vmatmul.mubr.msk.f32.vlgmr.msra.gmra.mrb[2].mxu0 %vm198_vm1, %v208_v19 }
 0x13c   : > { %v287_v21 = vpop.f32.mrb[0].mxu0  ;;  %v360_v22 = vpop.f32.mrb[0].mxu1 }
 0x13d   : > { %v434_v23 = vmul.f32 %v287_v21, %v287_v21  ;;  %v613_v24 = vpop.f32.mrb[1].mxu0  ;;  %v446_v25 = vmul.f32 %v360_v22, %v360_v22  ;;  %v618_v26 = vpop.f32.mrb[1].mxu1 }
 0x13f   : > { %v436_v27 = vsel %vm435_vm2, %v434_v23, 0.0  ;;  %v447_v31 = vsel %vm435_vm2, %v446_v25, 0.0 }
 0x140   : > { %437 = vadd.xlane.f32.xlu0 %v436_v27  ;;  %v430_v28 = vpop.f32.mrb[2].mxu0 }
 0x141   : > { %v458_v29 = vmul.f32 %v430_v28, %v430_v28  ;;  %v623_v30 = vpop.f32.mrb[3].mxu0 }
 0x143   : > { %v459_v32 = vsel %vm435_vm2, %v458_v29, 0.0 }
 0x144   : > { %448 = vadd.xlane.f32.xlu0 %v447_v31  ;;  %460 = vadd.xlane.f32.xlu1 %v459_v32 }
 0x1cd   : > { %v438_v33 = vpop.xlane.xlu0 %437 }
 0x1ce   : > { %v439_v34 = vrot.slane %v438_v33, 4 }
 0x1d0   : > { %v440_v35 = vadd.f32 %v439_v34, %v438_v33 }
 0x1d1   : > { %v449_v36 = vpop.xlane.xlu0 %448  ;;  %v461_v37 = vpop.xlane.xlu1 %460 }
 0x1d2   : > { %v441_v38 = vrot.slane %v440_v35, 2  ;;  %v450_v39 = vrot.slane %v449_v36, 4  ;;  %v462_v40 = vrot.slane %v461_v37, 4 }
 0x1d4   : > { %v442_v41 = vadd.f32 %v441_v38, %v440_v35  ;;  %v451_v42 = vadd.f32 %v450_v39, %v449_v36  ;;  %v463_v43 = vadd.f32 %v462_v40, %v461_v37 }
 0x1d6   : > { %v443_v44 = vrot.slane %v442_v41, 1  ;;  %v452_v45 = vrot.slane %v451_v42, 2  ;;  %v464_v46 = vrot.slane %v463_v43, 2 }
 0x1d8   : > { %v453_v47 = vadd.f32 %v452_v45, %v451_v42  ;;  %v465_v48 = vadd.f32 %v464_v46, %v463_v43  ;;  %v444_v50 = vadd.f32 %v443_v44, %v442_v41 }
 0x1da   : > { %v454_v49 = vrot.slane %v453_v47, 1  ;;  %v466_v51 = vrot.slane %v465_v48, 1  ;;  %v445_v54 = vmul.f32 0.020408163, %v444_v50 }
 0x1dc   : > { %v455_v52 = vadd.f32 %v454_v49, %v453_v47  ;;  %v467_v53 = vadd.f32 %v466_v51, %v465_v48 }
 0x1de   : > { %v456_v55 = vmul.f32 0.020408163, %v455_v52  ;;  %v468_v57 = vmul.f32 0.040816326, %v467_v53 }
 0x1e0   : > { %v457_v56 = vadd.f32 %v456_v55, %v445_v54 }
 0x1e2   : > { %v469_v58 = vsub.f32 %v457_v56, %v468_v57 }
 0x1e4   : > { %624 = vpush %v469_v58 }
 0x215   : > { %s625_s28 = spop %624 }
 0x216   : > { %s472_s4 = smul.f32 0.00024414063, %s625_s28 }
 0x218   : > { %v473_v59 = vstv %s472_s4 }
 0x219   : > { %474 = vst [vmem:[%s195_s20] sm:$0xff] %v473_v59 }
 0x21a   : > { %752 = shalt.err (!%p749_p1)
}
 0x21b   : > { %s753_s27 = scalar_lea.hbm %s1012_s17, 128  ;;  %s757_s8 = scalar_lea.hbm %s1058_s2, 256 }
 0x21c   : > { %p754_p11 = scmp.ne.s32.totalorder %s1012_s17, %s753_s27  ;;  %p758_p4 = scmp.lt.u32.totalorder %s1012_s17, %s1058_s2 }
 0x21d   : > { %p759_p10 = scmp.lt.u32.totalorder %s757_s8, %s753_s27  ;;  %p761_p13 = scmp.lt.u32.totalorder %s753_s27, %s1012_s17 }
 0x21e   : > { %p755_p12 = pnand %p754_p11, %p1071_p3 }
 0x21f   : > { %p760_p6 = por %p759_p10, %p758_p4 }
 0x220   : > { %p756_p2 = pneg %p755_p12 }
 0x221   : > { %p762_p7 = por %p761_p13, %p760_p6 }
 0x223   : > { %p763_p5 = pnand %p762_p7, %p756_p2 }
 0x225   : > { %766 = shalt.err (!%p763_p5)
}
 0x226   : > { %630 = dma.vmem_to_hbm [thread:$0]  (%p1071_p3), %s1014_s7, 128, %s1012_s17, %s476_s19  }
 0x227 PF: > { %s501_s29 = sand.u32 1, %s797_s9   ;;  %p1072_p8 = scmp.ne.s32.totalorder %s1064_s22, 0 }
 0x228   : > { %p1073_p9 = scmp.ge.s32.totalorder %s809_s12, 2  ;;  %s502_s20 = scalar_lea.sflag [#allocation4], %s501_s29 }
 0x22a   : > { %p640_p0 = pnand %p1073_p9, %p1072_p8 }
 0x22c   : > { %792 = dma.done.wait (!%p640_p0), %s502_s20, 128  }
 0x22d   : > { %794 = vsyncadd (!%p640_p0), %s502_s20, 4294967168  ;;  %p18_p1 = scmp.ge.s32.totalorder %s856_s15, 4   ;;  %s1074_s9 = smov %s801_s10 }
 0x22e   : > { %s1075_s10 = smov %s805_s11  ;;  %s1076_s11 = smov %s868_s18 }
 0x22f   : > { %s1077_s12 = smov %s856_s15  ;;  %20 = sbr.rel (!%p18_p1) target bundleno = 7 (0x7), region = 86 }
 0x236   :  { %507 = vsyncpa [#allocation3], 1 }
 0x237   :  { %509 = vsyncpa [#allocation3 + $0x1], 1 }
 0x238   :  { %510 = vsyncpa [#allocation6], 1 }
 0x239   :  { %512 = vsyncpa [#allocation6 + $0x1], 1 }
 0x23a   :  { %513 = vsyncpa [#allocation4], 1 }
 0x23b   :  { %515 = vsyncpa [#allocation4 + $0x1], 1 }

</bundles_post_ra>
